<compile_context>
chip_gen: v6e
topology: v6e:2x2x1
jax: 0.10.0
libtpu: 0.0.40
codegen_flags: <defaults>
</compile_context>

<pallas_src>
import jax
import jax.numpy as jnp
from jax.experimental import pallas as pl
from jax.experimental.pallas import tpu as pltpu


def ppo_critic_kernel(obs_ref, w1_ref, w2_ref, slab_ref, b3_ref, out_ref):
    """Fused extractor-MLP + value head for one batch tile.

    obs_ref  : (tb, D)  observation tile in natural batch-major layout
    w1_ref   : (H, D)   extractor layer-1 weight (PyTorch (out, in) layout)
    w2_ref   : (H, H)   extractor layer-2 weight
    slab_ref : (H, 3)   [b1 | b2 | w3] fused small parameters
    b3_ref   : (1,)     value head bias (SMEM scalar)
    out_ref  : (1, tb)  lane-dense value row
    """
    # Put the batch axis on lanes: transpose the block in-kernel (XLU slot),
    # hidden under the obs DMA / MXU, instead of a wrapper-side HBM transpose.
    x_t = obs_ref[...].T                                          # (D, tb)

    slab = slab_ref[...]
    b1 = slab[:, 0:1]                                             # (H, 1)
    b2 = slab[:, 1:2]                                             # (H, 1)
    w3 = slab[:, 2:3]                                             # (H, 1)

    # extractor layer 1: Linear + ReLU    h1 = relu(W1 @ x^T + b1)
    h1 = jnp.dot(w1_ref[...], x_t,
                 preferred_element_type=jnp.float32) + b1
    h1 = jnp.maximum(h1, 0.0)                                     # (H, tb) f32

    # extractor layer 2: Linear + ReLU    (feature = extractor(obs))
    h2 = jnp.dot(w2_ref[...], h1.astype(w2_ref.dtype),
                 preferred_element_type=jnp.float32) + b2
    h2 = jnp.maximum(h2, 0.0)                                     # (H, tb) f32

    # value head: VPU multiply + cross-sublane (XLU) reduce; lane-dense (1,tb).
    v = jnp.sum(h2 * w3, axis=0, keepdims=True) + b3_ref[0]
    out_ref[...] = v.astype(out_ref.dtype)


def _round_up(x: int, m: int) -> int:
    return (x + m - 1) // m * m


def ppo_critic_value(obs, params, *, tb=None, use_bf16=False):
    """PPOCritic.forward: value_out(extractor(obs)).squeeze(-1) -> (B,)."""
    B, D = obs.shape
    H = params["w1"].shape[0]
    LANE = 128

    w1, w2 = params["w1"], params["w2"]
    if use_bf16:
        # bf16 MXU path (valid on v5e/v6e/v7x). Accumulation stays f32 and
        # bias / ReLU / value head stay in f32 inside the kernel.
        obs = obs.astype(jnp.bfloat16)
        w1 = w1.astype(jnp.bfloat16)
        w2 = w2.astype(jnp.bfloat16)
    in_bytes = jnp.dtype(obs.dtype).itemsize

    # ---- tile-size heuristic (VMEM-budgeted, v7x-safe) ----------------------
    # Per batch column: obs block (double-buffered) + in-kernel transposed copy
    # + h1 + h2 (f32) + output row.  Weights/slab are constant-index blocks,
    # double-buffered by the pipeline.
    per_col = 3 * D * in_bytes + (2 * H + 2) * 4
    weight_bytes = 2 * ((H * D + H * H) * in_bytes + 3 * H * 4)
    budget = (20 << 20) - weight_bytes          # conservative under v7x VMEM
    tb_cap = max(LANE, min(4096, (max(budget, 0) // per_col) // LANE * LANE))

    if tb is None:
        if B <= LANE:
            n_tiles = 1                          # single step for tiny batches
        else:
            # >= 2 steps so the "parallel" grid axis can be split across both
            # v7x TensorCores; big tiles amortize the ~0.35us/step overhead.
            n_tiles = max(2, pl.cdiv(B, tb_cap))
        tb = min(tb_cap, _round_up(pl.cdiv(B, n_tiles), LANE))
    assert tb % LANE == 0, "tb must be lane-aligned (x128)"

    n_tiles = pl.cdiv(B, tb)
    B_pad = n_tiles * tb
    if B_pad != B:
        obs = jnp.pad(obs, ((0, B_pad - B), (0, 0)))   # pad rows; sliced off below

    out = pl.pallas_call(
        ppo_critic_kernel,
        out_shape=jax.ShapeDtypeStruct((1, B_pad), jnp.float32),
        grid_spec=pltpu.PrefetchScalarGridSpec(
            num_scalar_prefetch=0,
            grid=(n_tiles,),
            in_specs=[
                pl.BlockSpec((tb, D), lambda i: (i, 0)),   # obs tile (batch-major)
                pl.BlockSpec((H, D), lambda i: (0, 0)),    # W1 (constant index)
                pl.BlockSpec((H, H), lambda i: (0, 0)),    # W2 (constant index)
                pl.BlockSpec((H, 3), lambda i: (0, 0)),    # [b1|b2|w3] slab
                pl.BlockSpec(memory_space=pltpu.MemorySpace.SMEM),  # b3 scalar
            ],
            out_specs=pl.BlockSpec((1, tb), lambda i: (0, i)),
        ),
        compiler_params=pltpu.CompilerParams(
            dimension_semantics=("parallel",),
            vmem_limit_bytes=32 << 20,
        ),
    )(obs, w1, w2, params["slab"], params["b3"])

    return out[0, :B]          # (1, B_pad) -> (B,)  == .squeeze(dim=-1)


def init_params(key, obs_dim, hidden):
    """Deterministic synthetic parameters (PyTorch (out, in) weight layout)."""
    k1, k2, k3, k4, k5, k6 = jax.random.split(key, 6)
    b1 = jax.random.normal(k2, (hidden, 1), jnp.float32) * 0.01
    b2 = jax.random.normal(k4, (hidden, 1), jnp.float32) * 0.01
    # PPOCritic.value_out = nn.Linear(extractor.output_dim, 1)
    w3 = jax.random.normal(k5, (hidden, 1), jnp.float32) * 0.1
    return {
        "w1": jax.random.normal(k1, (hidden, obs_dim), jnp.float32) * 0.1,
        "w2": jax.random.normal(k3, (hidden, hidden), jnp.float32) * 0.1,
        # [b1 | b2 | w3] fused into one slab -> a single small DMA per call.
        "slab": jnp.concatenate([b1, b2, w3], axis=1),
        "b3": jax.random.normal(k6, (1,), jnp.float32) * 0.01,
    }


def reference_value(obs, p):
    b1, b2, w3 = p["slab"][:, 0], p["slab"][:, 1], p["slab"][:, 2]
    h1 = jnp.maximum(obs @ p["w1"].T + b1, 0.0)
    h2 = jnp.maximum(h1 @ p["w2"].T + b2, 0.0)
    return jnp.sum(h2 * w3, axis=-1) + p["b3"][0]


if __name__ == "__main__":
    B, OBS_DIM, HIDDEN = 16, 32, 64

    key = jax.random.PRNGKey(0)
    k_obs, k_par = jax.random.split(key)
    obs = jax.random.normal(k_obs, (B, OBS_DIM), jnp.float32)
    params = init_params(k_par, OBS_DIM, HIDDEN)

    values = ppo_critic_value(obs, params)
    values = jax.block_until_ready(values)

    ref = reference_value(obs, params)
    assert values.shape == (B,), values.shape
    assert jnp.allclose(values, ref, atol=1e-5, rtol=1e-4), (values, ref)

    print("KERNEL_OK")
</pallas_src>

<mosaic_0001>
module attributes {stable_mosaic.version = 11 : i64} {
  func.func @ppo_critic_kernel(%arg0: i32, %arg1: memref<128x32xf32, #tpu.memory_space<vmem>>, %arg2: memref<64x32xf32, #tpu.memory_space<vmem>>, %arg3: memref<64x64xf32, #tpu.memory_space<vmem>>, %arg4: memref<64x3xf32, #tpu.memory_space<vmem>>, %arg5: memref<1xf32, #tpu.memory_space<smem>>, %arg6: memref<1x128xf32, #tpu.memory_space<vmem>>) attributes {dimension_semantics = [#tpu.dimension_semantics<parallel>], iteration_bounds = array<i64: 1>, scalar_prefetch = 0 : i64, scratch_operands = 0 : i64, tpu.core_type = #tpu.core_type<tc>, window_params = [{transform_indices = @transform_0, window_bounds = array<i64: 128, 32>}, {pipeline_mode = #tpu.pipeline_mode<synchronous>, transform_indices = @transform_1, window_bounds = array<i64: 64, 32>}, {pipeline_mode = #tpu.pipeline_mode<synchronous>, transform_indices = @transform_2, window_bounds = array<i64: 64, 64>}, {pipeline_mode = #tpu.pipeline_mode<synchronous>, transform_indices = @transform_3, window_bounds = array<i64: 64, 3>}, {transform_indices = @transform_4, window_bounds = array<i64: 1>}, {transform_indices = @transform_5, window_bounds = array<i64: 1, 128>}]} {
    %c0 = arith.constant 0 : index
    %c0_0 = arith.constant 0 : index
    %0 = vector.load %arg1[%c0, %c0_0] : memref<128x32xf32, #tpu.memory_space<vmem>>, vector<128x32xf32>
    %1 = tpu.transpose %0, [1, 0] : vector<128x32xf32> -> vector<32x128xf32>
    %c0_1 = arith.constant 0 : index
    %c0_2 = arith.constant 0 : index
    %2 = vector.load %arg4[%c0_1, %c0_2] : memref<64x3xf32, #tpu.memory_space<vmem>>, vector<64x3xf32>
    %3 = vector.extract_strided_slice %2 {offsets = [0, 0], sizes = [64, 1], strides = [1, 1]} : vector<64x3xf32> to vector<64x1xf32>
    %4 = vector.extract_strided_slice %2 {offsets = [0, 1], sizes = [64, 1], strides = [1, 1]} : vector<64x3xf32> to vector<64x1xf32>
    %5 = vector.extract_strided_slice %2 {offsets = [0, 2], sizes = [64, 1], strides = [1, 1]} : vector<64x3xf32> to vector<64x1xf32>
    %c0_3 = arith.constant 0 : index
    %c0_4 = arith.constant 0 : index
    %6 = vector.load %arg2[%c0_3, %c0_4] : memref<64x32xf32, #tpu.memory_space<vmem>>, vector<64x32xf32>
    %cst = arith.constant dense<0.000000e+00> : vector<64x128xf32>
    %7 = tpu.matmul %6, %1, %cst {dimension_numbers = #tpu.dot_dimension_numbers<[1], [0], [0], [1], [0, 0, 1, 1], [], []>} : vector<64x32xf32>, vector<32x128xf32>, vector<64x128xf32> -> vector<64x128xf32>
    %8 = vector.broadcast %3 : vector<64x1xf32> to vector<64x128xf32>
    %9 = arith.addf %7, %8 : vector<64x128xf32>
    %cst_5 = arith.constant 0.000000e+00 : f32
    %10 = vector.broadcast %cst_5 : f32 to vector<64x128xf32>
    %11 = arith.maximumf %9, %10 : vector<64x128xf32>
    %c0_6 = arith.constant 0 : index
    %c0_7 = arith.constant 0 : index
    %12 = vector.load %arg3[%c0_6, %c0_7] : memref<64x64xf32, #tpu.memory_space<vmem>>, vector<64x64xf32>
    %cst_8 = arith.constant dense<0.000000e+00> : vector<64x128xf32>
    %13 = tpu.matmul %12, %11, %cst_8 {dimension_numbers = #tpu.dot_dimension_numbers<[1], [0], [0], [1], [0, 0, 1, 1], [], []>} : vector<64x64xf32>, vector<64x128xf32>, vector<64x128xf32> -> vector<64x128xf32>
    %14 = vector.broadcast %4 : vector<64x1xf32> to vector<64x128xf32>
    %15 = arith.addf %13, %14 : vector<64x128xf32>
    %cst_9 = arith.constant 0.000000e+00 : f32
    %16 = vector.broadcast %cst_9 : f32 to vector<64x128xf32>
    %17 = arith.maximumf %15, %16 : vector<64x128xf32>
    %18 = vector.broadcast %5 : vector<64x1xf32> to vector<64x128xf32>
    %19 = arith.mulf %17, %18 : vector<64x128xf32>
    %cst_10 = arith.constant dense<0.000000e+00> : vector<128xf32>
    %20 = vector.multi_reduction <add>, %19, %cst_10 [0] : vector<64x128xf32> to vector<128xf32>
    %21 = vector.shape_cast %20 : vector<128xf32> to vector<1x128xf32>
    %c0_11 = arith.constant 0 : index
    %22 = memref.load %arg5[%c0_11] : memref<1xf32, #tpu.memory_space<smem>>
    %23 = vector.broadcast %22 : f32 to vector<1x128xf32>
    %24 = arith.addf %21, %23 : vector<1x128xf32>
    %c0_12 = arith.constant 0 : index
    %c0_13 = arith.constant 0 : index
    %25 = vector.load %arg6[%c0_12, %c0_13] : memref<1x128xf32, #tpu.memory_space<vmem>>, vector<1x128xf32>
    tpu.vector_store %arg6[%c0_12, %c0_13], %24 {strides = array<i32>} : memref<1x128xf32, #tpu.memory_space<vmem>>, vector<1x128xf32>,
    return
  }
  func.func @transform_0(%arg0: i32) -> (i32, i32) {
    %c0_i32 = arith.constant 0 : i32
    %c0_i32_0 = arith.constant 0 : i32
    return %arg0, %c0_i32 : i32, i32
  }
  func.func @transform_1(%arg0: i32) -> (i32, i32) {
    %c0_i32 = arith.constant 0 : i32
    %c0_i32_0 = arith.constant 0 : i32
    %c0_i32_1 = arith.constant 0 : i32
    return %c0_i32, %c0_i32_0 : i32, i32
  }
  func.func @transform_2(%arg0: i32) -> (i32, i32) {
    %c0_i32 = arith.constant 0 : i32
    %c0_i32_0 = arith.constant 0 : i32
    %c0_i32_1 = arith.constant 0 : i32
    return %c0_i32, %c0_i32_0 : i32, i32
  }
  func.func @transform_3(%arg0: i32) -> (i32, i32) {
    %c0_i32 = arith.constant 0 : i32
    %c0_i32_0 = arith.constant 0 : i32
    %c0_i32_1 = arith.constant 0 : i32
    return %c0_i32, %c0_i32_0 : i32, i32
  }
  func.func @transform_4(%arg0: i32) -> i32 {
    %c0_i32 = arith.constant 0 : i32
    %c0_i32_0 = arith.constant 0 : i32
    return %c0_i32 : i32
  }
  func.func @transform_5(%arg0: i32) -> (i32, i32) {
    %c0_i32 = arith.constant 0 : i32
    %c0_i32_0 = arith.constant 0 : i32
    return %c0_i32, %arg0 : i32, i32
  }
}

</mosaic_0001>

<bundles_post_ra>
// kernel: tpu_custom_call.1
= control target key start
LH: loop header
LB: loop body
LE: loop exit
PB: predicated region body
PF: predicated region fallthrough
CT: control target
= control target key end

     0   :  { %vm94_vm0 = vcmask 261120   ;;  %v710_v2 = vmov 0   ;;  %s948_s0 = inlined_call_operand.vmem [shape: f32[128,32], index: 0, kind: input, shape index: {}]   ;;  %s949_s1 = inlined_call_operand.vmem [shape: f32[64,32], index: 1, kind: input, shape index: {}]   ;;  %s950_s2 = inlined_call_operand.vmem [shape: f32[64,64], index: 2, kind: input, shape index: {}]   ;;  %s951_s3 = inlined_call_operand.vmem [shape: f32[64,3], index: 3, kind: input, shape index: {}]   ;;  %s952_s4 = inlined_call_operand.<no memory space> [shape: f32[1], index: 4, kind: input, shape index: {}]   ;;  %s953_s5 = inlined_call_operand.hbm [shape: f32[1,128], index: 5, kind: output, shape index: {}]  }
   0x1   :  { %v37_v0 = vld [vmem:[%s948_s0 + $0x78] sm:$0xff]  ;;  %v36_v1 = vld [vmem:[%s948_s0 + $0x70] sm:$0xff]  ;;  %677 = vset.pattern.permute.xlu0 %v710_v2  ;;  %678 = vset.pattern.permute.xlu1 %v710_v2  ;;  %v35_v3 = vld [vmem:[%s948_s0 + $0x68] sm:$0xff] }
   0x2   :  { %601 = vmatprep.subr.msk.mxu0 %vm94_vm0, %v37_v0  ;;  %v46_v4 = vld [vmem:[%s949_s1] sm:$0xff]  ;;  %v768_v6 = vld [vmem:[%s951_s3 + $0x38] sm:$0xff]  ;;  %v773_v7 = vld [vmem:[%s951_s3 + $0x28] sm:$0xff] }
   0x3   :  { %602 = vmatpush3.xpose.msk.msra.mxu0 %vm94_vm0, %v37_v0  ;;  %633 = vmatprep.mubr.msk.f32.mxu0 %vm94_vm0, %v46_v4  ;;  %v34_v5 = vld [vmem:[%s948_s0 + $0x60] sm:$0xff]  ;;  %v781_v8 = vld [vmem:[%s951_s3 + $0x30] sm:$0xff] }
   0x4   :  { %603 = vmatprep.subr.msk.mxu0 %vm94_vm0, %v36_v1  ;;  %91 = vperm.xlu0 %677, %v768_v6   ;;  %v786_v9 = vld [vmem:[%s951_s3 + $0x20] sm:$0xff] }
   0x5   :  { %81 = vperm.xlu1 %678, %v773_v7  }
   0x7   :  { %604 = vmatpush3.xpose.msk.msra.mxu0 %vm94_vm0, %v36_v1 }
   0x8   :  { %605 = vmatprep.subr.msk.mxu0 %vm94_vm0, %v35_v3 }
   0xb   :  { %606 = vmatpush3.xpose.msk.msra.mxu0 %vm94_vm0, %v35_v3 }
   0xc   :  { %11 = vsyncpa [#allocation4], 0  ;;  %607 = vmatprep.subr.msk.mxu0 %vm94_vm0, %v34_v5  ;;  %v33_v10 = vld [vmem:[%s948_s0 + $0x58] sm:$0xff]  ;;  %86 = vperm.xlu0 %677, %v781_v8   ;;  %v803_v12 = vld [vmem:[%s951_s3 + $0x10] sm:$0xff]  ;;  %vm320_vm1 = vcmask 523264   ;;  %v711_v34 = vmov 1  }
   0xd   :  { %76 = vperm.xlu1 %678, %v786_v9   ;;  %v798_v11 = vld [vmem:[%s951_s3 + $0x18] sm:$0xff]  ;;  %v32_v13 = vld [vmem:[%s948_s0 + $0x50] sm:$0xff]  ;;  %v39_v14 = vld [vmem:[%s951_s3 + $0x8] sm:$0xff]  ;;  %v712_v35 = vmov 2   ;;  %s713_s20 = smov [#allocation3]  }
   0xe   :  { %v38_v15 = vld [vmem:[%s951_s3] sm:$0xff]  ;;  %v31_v16 = vld [vmem:[%s948_s0 + $0x48] sm:$0xff]  ;;  %v29_v18 = vld [vmem:[%s948_s0 + $0x38] sm:$0xff]  ;;  %s521_s21 = sshll.u32 %s713_s20, 4  ;;  %s522_s21 = int_to_ptr.vmem [resolvable:$true] %s521_s21 }
   0xf   :  { %608 = vmatpush3.xpose.msk.msra.mxu0 %vm94_vm0, %v34_v5  ;;  %v30_v17 = vld [vmem:[%s948_s0 + $0x40] sm:$0xff]  ;;  %v28_v19 = vld [vmem:[%s948_s0 + $0x30] sm:$0xff]  ;;  %v27_v20 = vld [vmem:[%s948_s0 + $0x28] sm:$0xff]  ;;  %s692_s22 = scalar_lea.vmem %s522_s21, 32  ;;  %p693_p1 = scmp.lt.s32.totalorder %s522_s21, %s522_s21 }
  0x10   :  { %609 = vmatprep.subr.msk.mxu0 %vm94_vm0, %v33_v10  ;;  %71 = vperm.xlu0 %677, %v798_v11   ;;  %v26_v21 = vld [vmem:[%s948_s0 + $0x20] sm:$0xff]  ;;  %v25_v22 = vld [vmem:[%s948_s0 + $0x18] sm:$0xff]  ;;  %v24_v23 = vld [vmem:[%s948_s0 + $0x10] sm:$0xff] }
  0x11   :  { %66 = vperm.xlu1 %678, %v803_v12   ;;  %v23_v24 = vld [vmem:[%s948_s0 + $0x8] sm:$0xff]  ;;  %v22_v25 = vld [vmem:[%s948_s0] sm:$0xff]  ;;  %v48_v27 = vld [vmem:[%s949_s1 + $0x10] sm:$0xff]  ;;  %s688_s0 = scalar_lea.vmem %s522_s21, 16 }
  0x12   :  { %v47_v26 = vld [vmem:[%s949_s1 + $0x8] sm:$0xff]  ;;  %v49_v28 = vld [vmem:[%s949_s1 + $0x18] sm:$0xff]  ;;  %v50_v29 = vld [vmem:[%s949_s1 + $0x20] sm:$0xff]  ;;  %p689_p0 = scmp.ne.s32.totalorder %s522_s21, %s688_s0  ;;  %p694_p2 = scmp.lt.s32.totalorder %s692_s22, %s688_s0 }
  0x13   :  { %610 = vmatpush3.xpose.msk.msra.mxu0 %vm94_vm0, %v33_v10  ;;  %v51_v30 = vld [vmem:[%s949_s1 + $0x28] sm:$0xff]  ;;  %v52_v31 = vld [vmem:[%s949_s1 + $0x30] sm:$0xff]  ;;  %v53_v32 = vld [vmem:[%s949_s1 + $0x38] sm:$0xff] }
  0x14   :  { %611 = vmatprep.subr.msk.mxu0 %vm94_vm0, %v32_v13  ;;  %61 = vperm.xlu0 %677, %v39_v14   ;;  %v280_v33 = vld [vmem:[%s950_s2] sm:$0xff]  ;;  %v281_v4 = vld [vmem:[%s950_s2 + $0x8] sm:$0xff]  ;;  %v282_v5 = vld [vmem:[%s950_s2 + $0x10] sm:$0xff]  ;;  %p695_p3 = por %p694_p2, %p693_p1 }
  0x15   :  { %56 = vperm.xlu1 %678, %v38_v15   ;;  %661 = vmatprep.mubr.msk.f32.mxu1 %vm320_vm1, %v280_v33  ;;  %v287_v10 = vld [vmem:[%s950_s2 + $0x38] sm:$0xff] }
  0x16   :  { %p696_p4 = pnand %p695_p3, %p689_p0 }
  0x17   :  { %612 = vmatpush3.xpose.msk.msra.mxu0 %vm94_vm0, %v32_v13 }
  0x18   :  { %613 = vmatprep.subr.msk.mxu0 %vm94_vm0, %v31_v16  ;;  %681 = vset.pattern.permute.xlu0 %v712_v35 }
  0x19   :  { %679 = vset.pattern.permute.xlu1 %v711_v34  ;;  %463 = vperm.xlu0 %681, %v39_v14  }
  0x1a   :  { %293 = vperm.xlu1 %679, %v39_v14  }
  0x1b   :  { %614 = vmatpush3.xpose.msk.msra.mxu0 %vm94_vm0, %v31_v16 }
  0x1c   :  { %615 = vmatprep.subr.msk.mxu0 %vm94_vm0, %v30_v17 }
  0x1d   :  { %682 = vset.pattern.permute.xlu0 %v711_v34 }
  0x1e   :  { %297 = vperm.xlu1 %679, %v803_v12   ;;  %289 = vperm.xlu0 %682, %v38_v15  }
  0x1f   :  { %616 = vmatpush3.xpose.msk.msra.mxu0 %vm94_vm0, %v30_v17 }
  0x20   :  { %617 = vmatprep.subr.msk.mxu0 %vm94_vm0, %v29_v18 }
  0x22   :  { %680 = vset.pattern.permute.xlu1 %v712_v35  ;;  %301 = vperm.xlu0 %682, %v798_v11  }
  0x23   :  { %618 = vmatpush3.xpose.msk.msra.mxu0 %vm94_vm0, %v29_v18  ;;  %459 = vperm.xlu1 %680, %v38_v15  }
  0x24   :  { %619 = vmatprep.subr.msk.mxu0 %vm94_vm0, %v28_v19 }
  0x26   :  { %309 = vperm.xlu0 %682, %v773_v7  }
  0x27   :  { %620 = vmatpush3.xpose.msk.msra.mxu0 %vm94_vm0, %v28_v19  ;;  %683 = vset.pattern.permute.xlu1 %v711_v34 }
  0x28   :  { %621 = vmatprep.subr.msk.mxu0 %vm94_vm0, %v27_v20  ;;  %305 = vperm.xlu1 %683, %v786_v9  }
  0x2a   :  { %686 = vset.pattern.permute.xlu0 %v712_v35 }
  0x2b   :  { %622 = vmatpush3.xpose.msk.msra.mxu0 %vm94_vm0, %v27_v20  ;;  %475 = vperm.xlu0 %686, %v786_v9   ;;  %v286_v9 = vld [vmem:[%s950_s2 + $0x30] sm:$0xff] }
  0x2c   :  { %623 = vmatprep.subr.msk.mxu0 %vm94_vm0, %v26_v21  ;;  %684 = vset.pattern.permute.xlu1 %v712_v35 }
  0x2d   :  { %467 = vperm.xlu1 %684, %v803_v12  }
  0x2f   :  { %624 = vmatpush3.xpose.msk.msra.mxu0 %vm94_vm0, %v26_v21  ;;  %483 = vperm.xlu0 %686, %v781_v8  }
  0x30   :  { %625 = vmatprep.subr.msk.mxu0 %vm94_vm0, %v25_v22 }
  0x31   :  { %471 = vperm.xlu1 %684, %v798_v11  }
  0x33   :  { %626 = vmatpush3.xpose.msk.msra.mxu0 %vm94_vm0, %v25_v22 }
  0x34   :  { %627 = vmatprep.subr.msk.mxu0 %vm94_vm0, %v24_v23 }
  0x35   :  { %685 = vset.pattern.permute.xlu1 %v711_v34 }
  0x36   :  { %313 = vperm.xlu1 %685, %v781_v8   ;;  %v285_v8 = vld [vmem:[%s950_s2 + $0x28] sm:$0xff] }
  0x37   :  { %628 = vmatpush3.xpose.msk.msra.mxu0 %vm94_vm0, %v24_v23 }
  0x38   :  { %629 = vmatprep.subr.msk.mxu0 %vm94_vm0, %v23_v24 }
  0x3a   :  { %317 = vperm.xlu1 %685, %v768_v6  }
  0x3b   :  { %630 = vmatpush3.xpose.msk.msra.mxu0 %vm94_vm0, %v23_v24 }
  0x3c   :  { %631 = vmatprep.subr.msk.mxu0 %vm94_vm0, %v22_v25 }
  0x3e   :  { %687 = vset.pattern.permute.xlu1 %v712_v35 }
  0x3f   :  { %632 = vmatpush3.xpose.msk.msra.mxu0 %vm94_vm0, %v22_v25  ;;  %479 = vperm.xlu1 %687, %v773_v7   ;;  %v284_v7 = vld [vmem:[%s950_s2 + $0x20] sm:$0xff] }
  0x42   :  { %634 = vmatmul.mubr.msk.f32.vlgmr.msra.gmra.mxu0 %vm94_vm0, %v47_v26 }
  0x43   :  { %636 = vmatprep.mubr.msk.f32.mxu0 %vm94_vm0, %v48_v27  ;;  %487 = vperm.xlu1 %687, %v768_v6   ;;  %v283_v6 = vld [vmem:[%s950_s2 + $0x18] sm:$0xff] }
  0x46   :  { %637 = vmatmul.mubr.msk.f32.gmra.mxu0 %vm94_vm0, %v49_v28 }
  0x47   :  { %639 = vmatprep.mubr.msk.f32.mxu0 %vm94_vm0, %v50_v29 }
  0x4a   :  { %640 = vmatmul.mubr.msk.f32.gmra.mxu0 %vm94_vm0, %v51_v30 }
  0x4b   :  { %642 = vmatprep.mubr.msk.f32.mxu0 %vm94_vm0, %v52_v31 }
  0x4e   :  { %643 = vmatmul.mubr.msk.f32.gmra.mxu0 %vm94_vm0, %v53_v32 }
  0x7f   :  { %v92_v37 = vpop.permute.xlu0 %91 }
  0x80   :  { %v82_v39 = vpop.permute.xlu1 %81 }
  0x87   :  { %v87_v42 = vpop.permute.xlu0 %86 }
  0x88   :  { %v77_v44 = vpop.permute.xlu1 %76 }
  0x8b   :  { %v72_v48 = vpop.permute.xlu0 %71 }
  0x8c   :  { %v67_v53 = vpop.permute.xlu1 %66 }
  0x8f   :  { %v62_v58 = vpop.permute.xlu0 %61 }
  0x90   :  { %v57_v61 = vpop.permute.xlu1 %56 }
  0x94   :  { %v464_v16 = vpop.permute.xlu0 %463 }
  0x95   :  { %v294_v11 = vpop.permute.xlu1 %293 }
  0x99   :  { %v298_v12 = vpop.permute.xlu1 %297  ;;  %v290_v18 = vpop.permute.xlu0 %289 }
  0x9d   :  { %v302_v21 = vpop.permute.xlu0 %301 }
  0x9e   :  { %v460_v13 = vpop.permute.xlu1 %459 }
  0xa1   :  { %v310_v31 = vpop.permute.xlu0 %309 }
  0xa3   :  { %v306_v14 = vpop.permute.xlu1 %305 }
  0xa8   :  { %v468_v15 = vpop.permute.xlu1 %467 }
  0xac   :  { %v472_v17 = vpop.permute.xlu1 %471 }
  0xb1   :  { %v314_v20 = vpop.permute.xlu1 %313 }
  0xb5   :  { %v318_v30 = vpop.permute.xlu1 %317 }
 0x102   :  { %v635_v36 = vpop.f32.mrf.mxu0 }
 0x103   :  { %v239_v62 = vadd.f32 %v635_v36, %v62_v58 }
 0x104   :  { %v233_v38 = vpop.f32.mrf.mxu0 }
 0x105   :  { %v234_v0 = vadd.f32 %v233_v38, %v57_v61  ;;  %v273_v2 = vmax.f32 %v239_v62, 0.0 }
 0x106   :  { %v638_v40 = vpop.f32.mrf.mxu0 }
 0x107   :  { %v249_v56 = vadd.f32 %v638_v40, %v72_v48  ;;  %v272_v3 = vmax.f32 %v234_v0, 0.0 }
 0x108   :  { %v243_v41 = vpop.f32.mrf.mxu0 }
 0x109   :  { %v244_v59 = vadd.f32 %v243_v41, %v67_v53  ;;  %v275_v63 = vmax.f32 %v249_v56, 0.0 }
 0x10a   :  { %v641_v43 = vpop.f32.mrf.mxu0 }
 0x10b   :  { %v259_v50 = vadd.f32 %v641_v43, %v82_v39  ;;  %v274_v1 = vmax.f32 %v244_v59, 0.0 }
 0x10c   :  { %v253_v45 = vpop.f32.mrf.mxu0 }
 0x10d   :  { %v254_v54 = vadd.f32 %v253_v45, %v77_v44  ;;  %v277_v57 = vmax.f32 %v259_v50, 0.0  ;;  %v480_v45 = vpop.permute.xlu1 %479 }
 0x10e   :  { %v644_v46 = vpop.f32.mrf.mxu0 }
 0x10f   :  { %v269_v47 = vadd.f32 %v644_v46, %v92_v37  ;;  %v276_v60 = vmax.f32 %v254_v54, 0.0 }
 0x110   :  { %v263_v49 = vpop.f32.mrf.mxu0 }
 0x111   :  { %v279_v51 = vmax.f32 %v269_v47, 0.0  ;;  %v264_v52 = vadd.f32 %v263_v49, %v87_v42  ;;  %v476_v42 = vpop.permute.xlu0 %475 }
 0x113   :  { %v278_v55 = vmax.f32 %v264_v52, 0.0  ;;  %645 = vmatprep.subr.mxu1 %v279_v51 }
 0x114   :  { %646 = vmatpush3.msra.mxu1 %v279_v51 }
 0x115   :  { %647 = vmatprep.subr.mxu1 %v278_v55  ;;  %v484_v59 = vpop.permute.xlu0 %483 }
 0x116   :  { %648 = vmatpush3.msra.mxu1 %v278_v55 }
 0x117   :  { %649 = vmatprep.subr.mxu1 %v277_v57 }
 0x118   :  { %650 = vmatpush3.msra.mxu1 %v277_v57 }
 0x119   :  { %651 = vmatprep.subr.mxu1 %v276_v60 }
 0x11a   :  { %652 = vmatpush3.msra.mxu1 %v276_v60  ;;  %v488_v60 = vpop.permute.xlu1 %487 }
 0x11b   :  { %653 = vmatprep.subr.mxu1 %v275_v63 }
 0x11c   :  { %654 = vmatpush3.msra.mxu1 %v275_v63 }
 0x11d   :  { %655 = vmatprep.subr.mxu1 %v274_v1 }
 0x11e   :  { %656 = vmatpush3.msra.mxu1 %v274_v1 }
 0x11f   :  { %657 = vmatprep.subr.mxu1 %v273_v2 }
 0x120   :  { %658 = vmatpush3.msra.mxu1 %v273_v2 }
 0x121   :  { %659 = vmatprep.subr.mxu1 %v272_v3 }
 0x122   :  { %660 = vmatpush3.msra.mxu1 %v272_v3 }
 0x123   :  { %662 = vmatmul.mubr.msk.f32.vlgmr.msra.gmra.mxu1 %vm320_vm1, %v281_v4 }
 0x124   :  { %664 = vmatprep.mubr.msk.f32.mxu1 %vm320_vm1, %v282_v5 }
 0x127   :  { %665 = vmatmul.mubr.msk.f32.gmra.mxu1 %vm320_vm1, %v283_v6 }
 0x128   :  { %667 = vmatprep.mubr.msk.f32.mxu1 %vm320_vm1, %v284_v7  ;;  %v512_v7 = vstv %s952_s4 }
 0x12b   :  { %668 = vmatmul.mubr.msk.f32.gmra.mxu1 %vm320_vm1, %v285_v8 }
 0x12c   :  { %670 = vmatprep.mubr.msk.f32.mxu1 %vm320_vm1, %v286_v9 }
 0x12f   :  { %671 = vmatmul.mubr.msk.f32.gmra.mxu1 %vm320_vm1, %v287_v10 }
 0x1e3   :  { %v663_v19 = vpop.f32.mrf.mxu1 }
 0x1e4   :  { %v417_v22 = vadd.f32 %v663_v19, %v294_v11 }
 0x1e5   :  { %v411_v23 = vpop.f32.mrf.mxu1 }
 0x1e6   :  { %v412_v24 = vadd.f32 %v411_v23, %v290_v18  ;;  %v451_v26 = vmax.f32 %v417_v22, 0.0 }
 0x1e7   :  { %v666_v25 = vpop.f32.mrf.mxu1 }
 0x1e8   :  { %v450_v27 = vmax.f32 %v412_v24, 0.0  ;;  %v427_v28 = vadd.f32 %v666_v25, %v302_v21  ;;  %v491_v36 = vmul.f32 %v464_v16, %v451_v26 }
 0x1e9   :  { %v421_v29 = vpop.f32.mrf.mxu1 }
 0x1ea   :  { %v490_v32 = vmul.f32 %v460_v13, %v450_v27  ;;  %v422_v33 = vadd.f32 %v421_v29, %v298_v12  ;;  %v453_v34 = vmax.f32 %v427_v28, 0.0 }
 0x1eb   :  { %v669_v35 = vpop.f32.mrf.mxu1 }
 0x1ec   :  { %v452_v37 = vmax.f32 %v422_v33, 0.0  ;;  %v437_v38 = vadd.f32 %v669_v35, %v310_v31  ;;  %v498_v40 = vadd.f32 %v491_v36, %v490_v32  ;;  %v493_v44 = vmul.f32 %v472_v17, %v453_v34 }
 0x1ed   :  { %v431_v39 = vpop.f32.mrf.mxu1 }
 0x1ee   :  { %v492_v41 = vmul.f32 %v468_v15, %v452_v37  ;;  %v432_v43 = vadd.f32 %v431_v39, %v306_v14  ;;  %v455_v48 = vmax.f32 %v437_v38, 0.0 }
 0x1ef   :  { %v672_v46 = vpop.f32.mrf.mxu1 }
 0x1f0   :  { %v499_v47 = vadd.f32 %v498_v40, %v492_v41  ;;  %v454_v49 = vmax.f32 %v432_v43, 0.0  ;;  %v447_v50 = vadd.f32 %v672_v46, %v318_v30  ;;  %v495_v55 = vmul.f32 %v480_v45, %v455_v48 }
 0x1f1   :  { %v441_v51 = vpop.f32.mrf.mxu1 }
 0x1f2   :  { %v494_v52 = vmul.f32 %v476_v42, %v454_v49  ;;  %v500_v53 = vadd.f32 %v499_v47, %v493_v44  ;;  %v442_v54 = vadd.f32 %v441_v51, %v314_v20  ;;  %v457_v57 = vmax.f32 %v447_v50, 0.0 }
 0x1f4   :  { %v501_v56 = vadd.f32 %v500_v53, %v494_v52  ;;  %v456_v58 = vmax.f32 %v442_v54, 0.0  ;;  %v497_v63 = vmul.f32 %v488_v60, %v457_v57 }
 0x1f6   :  { %v502_v61 = vadd.f32 %v501_v56, %v495_v55  ;;  %v496_v62 = vmul.f32 %v484_v59, %v456_v58 }
 0x1f8   :  { %v503_v0 = vadd.f32 %v502_v61, %v496_v62 }
 0x1fa   :  { %v504_v1 = vadd.f32 %v503_v0, %v497_v63 }
 0x1fc   :  { %v505_v2 = vrot.slane %v504_v1, 4 }
 0x1fe   :  { %v506_v3 = vadd.f32 %v505_v2, %v504_v1 }
 0x200   :  { %v507_v4 = vrot.slane %v506_v3, 2 }
 0x202   :  { %v508_v5 = vadd.f32 %v507_v4, %v506_v3 }
 0x204   :  { %v509_v6 = vrot.slane %v508_v5, 1 }
 0x206   :  { %v510_v8 = vadd.f32 %v509_v6, %v508_v5 }
 0x208   :  { %v513_v9 = vadd.f32 %v512_v7, %v510_v8 }
 0x20a   :  { %514 = vst [vmem:[#allocation3] sm:$0x1] %v513_v9 }
 0x20b   :  { %699 = shalt.err (!%p696_p4)
}
 0x20c   :  { %524 = dma.vmem_to_hbm [thread:$0]  %s522_s21, 16, %s953_s5, [#allocation4]  }
 0x20d   :  { %708 = dma.done.wait [#allocation4], 16  }
 0x20e   :  { %709 = vsyncadd [#allocation4], 4294967280 }
 0x20f   :  { %528 = vsyncpa [#allocation4], 1 }

</bundles_post_ra>
